<compile_context>
chip_gen: v6e
topology: v6e:2x2x1
jax: 0.10.0
libtpu: 0.0.40
codegen_flags: <defaults>
</compile_context>

<pallas_src>
import jax
import jax.numpy as jnp
import numpy as np
from jax.experimental import pallas as pl
from jax.experimental.pallas import tpu as pltpu

EPS = 1e-5  # nn.BatchNorm2d default eps


# ------------------------------- Pallas kernels -------------------------------

def conv_bias_stats_kernel(xp_ref, wb_ref, b_ref, y_ref, sum_ref, ssq_ref):
    """One image: 3x3 conv (3 banded MXU matmuls, bf16 in / f32 acc) + bias + BN partials.

    xp_ref : (1, H+2, (W+2)*Cin)     bf16  zero-padded input, W and Cin flattened
    wb_ref : (3, (W+2)*Cin, W*Cout)  bf16  banded weights (dy on axis 0)
    b_ref  : (1, W*Cout)             f32   conv bias tiled over W
    y_ref  : (1, H, W*Cout)          f32   conv output (pre-BN), lane-dense
    sum_ref: (1, 1, W*Cout)          f32   per-lane sum over H   (BN partial)
    ssq_ref: (1, 1, W*Cout)          f32   per-lane sum of squares over H
    """
    H = y_ref.shape[1]
    wcout = y_ref.shape[2]
    acc = jnp.zeros((H, wcout), dtype=jnp.float32)
    for dy in range(3):  # static unroll; the dx taps are folded into K by the banding
        acc = acc + jnp.dot(xp_ref[0, dy:dy + H, :], wb_ref[dy],
                            preferred_element_type=jnp.float32)
    acc = acc + b_ref[...]
    y_ref[0] = acc
    sum_ref[0] = jnp.sum(acc, axis=0, keepdims=True)
    ssq_ref[0] = jnp.sum(acc * acc, axis=0, keepdims=True)


def bn_relu_kernel(y_ref, scale_ref, shift_ref, o_ref):
    """Elementwise y*scale + shift then ReLU; all operands lane-dense (last dim W*Cout)."""
    o_ref[...] = jnp.maximum(
        y_ref[...] * scale_ref[...] + shift_ref[...], 0.0).astype(o_ref.dtype)


# ------------------------------ wrapper helpers --------------------------------

def _make_banded_weights(wt, W):
    """PyTorch (Cout, Cin, 3, 3) -> (3, (W+2)*Cin, W*Cout) banded matrices.

    wb[dy, (w+dx)*Cin + ci, w*Cout + co] = wt[co, ci, dy, dx]; zero elsewhere.
    Built via a static numpy placement tensor + einsum (no device scatter).
    """
    Cout, Cin, KH, KW = wt.shape
    Wp = W + KW - 1
    dx = np.arange(KW)[:, None, None]
    w = np.arange(W)[None, :, None]
    wp = np.arange(Wp)[None, None, :]
    P = jnp.asarray((wp == w + dx).astype(np.float32), dtype=wt.dtype)  # (KW, W, Wp)
    wv = jnp.transpose(wt, (2, 3, 1, 0))                                # (dy, dx, ci, co)
    wb = jnp.einsum("xwp,yxic->ypiwc", P, wv)                           # (dy, wp, ci, w, co)
    return wb.reshape(KH, Wp * Cin, W * Cout)


def _row_tile(nh):
    """Row tile for the elementwise pass: multiple of 8 dividing nh, else whole array."""
    for r in (1024, 512, 256, 128, 64, 32, 16, 8):
        if nh % r == 0:
            return r
    return nh


def conv_bn_relu(xp_flat, wt, b, gamma, beta, *, N, H, W, Cin, out_dtype):
    """One Conv3x3(pad=1) + BatchNorm(training stats) + ReLU layer.

    xp_flat: (N, H+2, (W+2)*Cin) bf16 zero-padded activation (flattened NHWC).
    Returns (N*H, W*Cout) activation in `out_dtype`.
    """
    Cout = wt.shape[0]
    Hp, Wp = H + 2, W + 2
    wcout = W * Cout

    wb = _make_banded_weights(wt, W).astype(jnp.bfloat16)         # (3, Wp*Cin, W*Cout)
    b_t = jnp.tile(b.astype(jnp.float32), W).reshape(1, wcout)

    flops = 2 * N * 3 * H * (Wp * Cin) * wcout
    bytes_accessed = (xp_flat.size * 2 + wb.size * 2 + b_t.size * 4
                      + N * H * wcout * 4 + 2 * N * wcout * 4)

    # Pass 1: conv + bias + per-image BN partial stats (grid over images, parallel).
    # The weight / bias blocks have constant index maps -> stay resident in VMEM.
    y, psum, pssq = pl.pallas_call(
        conv_bias_stats_kernel,
        grid=(N,),
        in_specs=[
            pl.BlockSpec((1, Hp, Wp * Cin), lambda n: (n, 0, 0)),
            pl.BlockSpec((3, Wp * Cin, wcout), lambda n: (0, 0, 0)),
            pl.BlockSpec((1, wcout), lambda n: (0, 0)),
        ],
        out_specs=[
            pl.BlockSpec((1, H, wcout), lambda n: (n, 0, 0)),
            pl.BlockSpec((1, 1, wcout), lambda n: (n, 0, 0)),
            pl.BlockSpec((1, 1, wcout), lambda n: (n, 0, 0)),
        ],
        out_shape=[
            jax.ShapeDtypeStruct((N, H, wcout), jnp.float32),
            jax.ShapeDtypeStruct((N, 1, wcout), jnp.float32),
            jax.ShapeDtypeStruct((N, 1, wcout), jnp.float32),
        ],
        compiler_params=pltpu.CompilerParams(
            dimension_semantics=("parallel",),
            vmem_limit_bytes=32 * 1024 * 1024),
        cost_estimate=pl.CostEstimate(
            flops=int(flops), transcendentals=0,
            bytes_accessed=int(bytes_accessed)),
    )(xp_flat, wb, b_t)

    # Tiny per-channel stat fold (exact stats over all N*H*W pixels -> matches
    # training-mode BatchNorm2d with biased variance).
    cnt = N * H * W
    s = jnp.sum(psum.reshape(N, W, Cout), axis=(0, 1))
    sq = jnp.sum(pssq.reshape(N, W, Cout), axis=(0, 1))
    mean = s / cnt
    var = jnp.maximum(sq / cnt - mean * mean, 0.0)
    scale = gamma * jax.lax.rsqrt(var + EPS)
    shift = beta - mean * scale
    scale_t = jnp.tile(scale, W).reshape(1, wcout)
    shift_t = jnp.tile(shift, W).reshape(1, wcout)

    # Pass 2: normalize + ReLU on a lane-dense (N*H, W*Cout) view.
    nh = N * H
    r = _row_tile(nh)
    out = pl.pallas_call(
        bn_relu_kernel,
        grid=(nh // r,),
        in_specs=[
            pl.BlockSpec((r, wcout), lambda i: (i, 0)),
            pl.BlockSpec((1, wcout), lambda i: (0, 0)),
            pl.BlockSpec((1, wcout), lambda i: (0, 0)),
        ],
        out_specs=pl.BlockSpec((r, wcout), lambda i: (i, 0)),
        out_shape=jax.ShapeDtypeStruct((nh, wcout), out_dtype),
        compiler_params=pltpu.CompilerParams(
            dimension_semantics=("parallel",),
            vmem_limit_bytes=32 * 1024 * 1024),
    )(y.reshape(nh, wcout), scale_t, shift_t)
    return out


@jax.jit
def conv_block_forward(x_nchw, params):
    N, Cin, H, W = x_nchw.shape
    C1 = params["w1"].shape[0]
    C2 = params["w2"].shape[0]

    # NCHW -> NHWC once at the model boundary; stay in flattened NHWC afterwards.
    x = jnp.transpose(x_nchw, (0, 2, 3, 1))
    xp = jnp.pad(x, ((0, 0), (1, 1), (1, 1), (0, 0)))
    xp = xp.reshape(N, H + 2, (W + 2) * Cin).astype(jnp.bfloat16)

    h1 = conv_bn_relu(xp, params["w1"], params["b1"], params["g1"], params["be1"],
                      N=N, H=H, W=W, Cin=Cin, out_dtype=jnp.bfloat16)   # (N*H, W*C1)

    # Zero-pad for the second conv directly in the flattened layout:
    # padding W by one pixel == padding the last axis by C1 on each side.
    h1p = jnp.pad(h1.reshape(N, H, W * C1), ((0, 0), (1, 1), (C1, C1)))

    h2 = conv_bn_relu(h1p, params["w2"], params["b2"], params["g2"], params["be2"],
                      N=N, H=H, W=W, Cin=C1, out_dtype=jnp.float32)     # (N*H, W*C2)

    out = h2.reshape(N, H, W, C2)
    return jnp.transpose(out, (0, 3, 1, 2))                              # NHWC -> NCHW


# ---------------- pure-JAX reference (same bf16-operand conv policy) ----------------

def _ref_conv_bn_relu(x_nhwc, wt, b, gamma, beta):
    # Matches the kernel's mixed-precision policy: bf16 conv operands, f32
    # accumulation, f32 BatchNorm (training-mode biased batch stats) and ReLU.
    w_hwio = jnp.transpose(wt, (2, 3, 1, 0)).astype(jnp.bfloat16)
    y = jax.lax.conv_general_dilated(
        x_nhwc.astype(jnp.bfloat16), w_hwio, window_strides=(1, 1), padding="SAME",
        dimension_numbers=("NHWC", "HWIO", "NHWC"),
        preferred_element_type=jnp.float32) + b
    mean = jnp.mean(y, axis=(0, 1, 2), keepdims=True)
    var = jnp.mean(jnp.square(y - mean), axis=(0, 1, 2), keepdims=True)
    return jnp.maximum((y - mean) * jax.lax.rsqrt(var + EPS) * gamma + beta, 0.0)


def _ref_forward(x_nchw, p):
    x = jnp.transpose(x_nchw, (0, 2, 3, 1))
    h = _ref_conv_bn_relu(x, p["w1"], p["b1"], p["g1"], p["be1"])
    h = _ref_conv_bn_relu(h, p["w2"], p["b2"], p["g2"], p["be2"])
    return jnp.transpose(h, (0, 3, 1, 2))


if __name__ == "__main__":
    in_c, out_c = 4, 8
    N, H, W = 2, 16, 16

    key = jax.random.PRNGKey(0)
    kx, k1, k2, k3, k4, k5, k6, k7, k8 = jax.random.split(key, 9)

    x = jax.random.normal(kx, (N, in_c, H, W), dtype=jnp.float32)  # NCHW like PyTorch

    params = {
        "w1": 0.1 * jax.random.normal(k1, (out_c, in_c, 3, 3), jnp.float32),
        "b1": 0.1 * jax.random.normal(k2, (out_c,), jnp.float32),
        "g1": 1.0 + 0.1 * jax.random.normal(k3, (out_c,), jnp.float32),
        "be1": 0.1 * jax.random.normal(k4, (out_c,), jnp.float32),
        "w2": 0.1 * jax.random.normal(k5, (out_c, out_c, 3, 3), jnp.float32),
        "b2": 0.1 * jax.random.normal(k6, (out_c,), jnp.float32),
        "g2": 1.0 + 0.1 * jax.random.normal(k7, (out_c,), jnp.float32),
        "be2": 0.1 * jax.random.normal(k8, (out_c,), jnp.float32),
    }

    out = jax.block_until_ready(conv_block_forward(x, params))
    ref = jax.block_until_ready(_ref_forward(x, params))

    assert out.shape == (N, out_c, H, W), out.shape
    max_err = float(jnp.max(jnp.abs(out - ref)))
    assert max_err < 2e-2, f"mismatch vs reference, max abs err = {max_err}"
    print("KERNEL_OK")
</pallas_src>

<mosaic_0001>
module attributes {stable_mosaic.version = 11 : i64} {
  func.func @conv_bias_stats_kernel(%arg0: i32, %arg1: memref<1x18x72xbf16, #tpu.memory_space<vmem>>, %arg2: memref<3x72x128xbf16, #tpu.memory_space<vmem>>, %arg3: memref<1x128xf32, #tpu.memory_space<vmem>>, %arg4: memref<1x16x128xf32, #tpu.memory_space<vmem>>, %arg5: memref<1x1x128xf32, #tpu.memory_space<vmem>>, %arg6: memref<1x1x128xf32, #tpu.memory_space<vmem>>) attributes {dimension_semantics = [#tpu.dimension_semantics<parallel>], iteration_bounds = array<i64: 2>, scalar_prefetch = 0 : i64, scratch_operands = 0 : i64, tpu.core_type = #tpu.core_type<tc>, window_params = [{transform_indices = @transform_0, window_bounds = array<i64: 1, 18, 72>}, {pipeline_mode = #tpu.pipeline_mode<synchronous>, transform_indices = @transform_1, window_bounds = array<i64: 3, 72, 128>}, {pipeline_mode = #tpu.pipeline_mode<synchronous>, transform_indices = @transform_2, window_bounds = array<i64: 1, 128>}, {transform_indices = @transform_3, window_bounds = array<i64: 1, 16, 128>}, {transform_indices = @transform_4, window_bounds = array<i64: 1, 1, 128>}, {transform_indices = @transform_5, window_bounds = array<i64: 1, 1, 128>}]} {
    %cst = arith.constant 0.000000e+00 : f32
    %0 = vector.broadcast %cst : f32 to vector<16x128xf32>
    %c0 = arith.constant 0 : index
    %c0_0 = arith.constant 0 : index
    %c0_1 = arith.constant 0 : index
    %1 = vector.load %arg1[%c0, %c0_0, %c0_1] : memref<1x18x72xbf16, #tpu.memory_space<vmem>>, vector<1x16x72xbf16>
    %2 = vector.shape_cast %1 : vector<1x16x72xbf16> to vector<16x72xbf16>
    %c0_2 = arith.constant 0 : index
    %c0_3 = arith.constant 0 : index
    %c0_4 = arith.constant 0 : index
    %3 = vector.load %arg2[%c0_2, %c0_3, %c0_4] : memref<3x72x128xbf16, #tpu.memory_space<vmem>>, vector<1x72x128xbf16>
    %4 = vector.shape_cast %3 : vector<1x72x128xbf16> to vector<72x128xbf16>
    %cst_5 = arith.constant dense<0.000000e+00> : vector<16x128xf32>
    %5 = tpu.matmul %2, %4, %cst_5 {dimension_numbers = #tpu.dot_dimension_numbers<[1], [0], [0], [1], [0, 0, 1, 1], [], []>} : vector<16x72xbf16>, vector<72x128xbf16>, vector<16x128xf32> -> vector<16x128xf32>
    %6 = arith.addf %0, %5 : vector<16x128xf32>
    %c0_6 = arith.constant 0 : index
    %c1 = arith.constant 1 : index
    %c0_7 = arith.constant 0 : index
    %7 = vector.load %arg1[%c0_6, %c1, %c0_7] : memref<1x18x72xbf16, #tpu.memory_space<vmem>>, vector<1x16x72xbf16>
    %8 = vector.shape_cast %7 : vector<1x16x72xbf16> to vector<16x72xbf16>
    %c1_8 = arith.constant 1 : index
    %c0_9 = arith.constant 0 : index
    %c0_10 = arith.constant 0 : index
    %9 = vector.load %arg2[%c1_8, %c0_9, %c0_10] : memref<3x72x128xbf16, #tpu.memory_space<vmem>>, vector<1x72x128xbf16>
    %10 = vector.shape_cast %9 : vector<1x72x128xbf16> to vector<72x128xbf16>
    %cst_11 = arith.constant dense<0.000000e+00> : vector<16x128xf32>
    %11 = tpu.matmul %8, %10, %cst_11 {dimension_numbers = #tpu.dot_dimension_numbers<[1], [0], [0], [1], [0, 0, 1, 1], [], []>} : vector<16x72xbf16>, vector<72x128xbf16>, vector<16x128xf32> -> vector<16x128xf32>
    %12 = arith.addf %6, %11 : vector<16x128xf32>
    %c0_12 = arith.constant 0 : index
    %c2 = arith.constant 2 : index
    %c0_13 = arith.constant 0 : index
    %13 = vector.load %arg1[%c0_12, %c2, %c0_13] : memref<1x18x72xbf16, #tpu.memory_space<vmem>>, vector<1x16x72xbf16>
    %14 = vector.shape_cast %13 : vector<1x16x72xbf16> to vector<16x72xbf16>
    %c2_14 = arith.constant 2 : index
    %c0_15 = arith.constant 0 : index
    %c0_16 = arith.constant 0 : index
    %15 = vector.load %arg2[%c2_14, %c0_15, %c0_16] : memref<3x72x128xbf16, #tpu.memory_space<vmem>>, vector<1x72x128xbf16>
    %16 = vector.shape_cast %15 : vector<1x72x128xbf16> to vector<72x128xbf16>
    %cst_17 = arith.constant dense<0.000000e+00> : vector<16x128xf32>
    %17 = tpu.matmul %14, %16, %cst_17 {dimension_numbers = #tpu.dot_dimension_numbers<[1], [0], [0], [1], [0, 0, 1, 1], [], []>} : vector<16x72xbf16>, vector<72x128xbf16>, vector<16x128xf32> -> vector<16x128xf32>
    %18 = arith.addf %12, %17 : vector<16x128xf32>
    %c0_18 = arith.constant 0 : index
    %c0_19 = arith.constant 0 : index
    %19 = vector.load %arg3[%c0_18, %c0_19] : memref<1x128xf32, #tpu.memory_space<vmem>>, vector<1x128xf32>
    %20 = vector.broadcast %19 : vector<1x128xf32> to vector<16x128xf32>
    %21 = arith.addf %18, %20 : vector<16x128xf32>
    %c0_20 = arith.constant 0 : index
    %c0_21 = arith.constant 0 : index
    %c0_22 = arith.constant 0 : index
    %22 = vector.load %arg4[%c0_20, %c0_21, %c0_22] : memref<1x16x128xf32, #tpu.memory_space<vmem>>, vector<1x16x128xf32>
    %23 = vector.shape_cast %22 : vector<1x16x128xf32> to vector<16x128xf32>
    %24 = vector.shape_cast %21 : vector<16x128xf32> to vector<1x16x128xf32>
    tpu.vector_store %arg4[%c0_20, %c0_21, %c0_22], %24 {strides = array<i32>} : memref<1x16x128xf32, #tpu.memory_space<vmem>>, vector<1x16x128xf32>,
    %cst_23 = arith.constant dense<0.000000e+00> : vector<128xf32>
    %25 = vector.multi_reduction <add>, %21, %cst_23 [0] : vector<16x128xf32> to vector<128xf32>
    %26 = vector.shape_cast %25 : vector<128xf32> to vector<1x128xf32>
    %c0_24 = arith.constant 0 : index
    %c0_25 = arith.constant 0 : index
    %c0_26 = arith.constant 0 : index
    %27 = vector.load %arg5[%c0_24, %c0_25, %c0_26] : memref<1x1x128xf32, #tpu.memory_space<vmem>>, vector<1x1x128xf32>
    %28 = vector.shape_cast %27 : vector<1x1x128xf32> to vector<1x128xf32>
    %29 = vector.shape_cast %26 : vector<1x128xf32> to vector<1x1x128xf32>
    tpu.vector_store %arg5[%c0_24, %c0_25, %c0_26], %29 {strides = array<i32>} : memref<1x1x128xf32, #tpu.memory_space<vmem>>, vector<1x1x128xf32>,
    %30 = arith.mulf %21, %21 : vector<16x128xf32>
    %cst_27 = arith.constant dense<0.000000e+00> : vector<128xf32>
    %31 = vector.multi_reduction <add>, %30, %cst_27 [0] : vector<16x128xf32> to vector<128xf32>
    %32 = vector.shape_cast %31 : vector<128xf32> to vector<1x128xf32>
    %c0_28 = arith.constant 0 : index
    %c0_29 = arith.constant 0 : index
    %c0_30 = arith.constant 0 : index
    %33 = vector.load %arg6[%c0_28, %c0_29, %c0_30] : memref<1x1x128xf32, #tpu.memory_space<vmem>>, vector<1x1x128xf32>
    %34 = vector.shape_cast %33 : vector<1x1x128xf32> to vector<1x128xf32>
    %35 = vector.shape_cast %32 : vector<1x128xf32> to vector<1x1x128xf32>
    tpu.vector_store %arg6[%c0_28, %c0_29, %c0_30], %35 {strides = array<i32>} : memref<1x1x128xf32, #tpu.memory_space<vmem>>, vector<1x1x128xf32>,
    return
  }
  func.func @transform_0(%arg0: i32) -> (i32, i32, i32) {
    %c0_i32 = arith.constant 0 : i32
    %c0_i32_0 = arith.constant 0 : i32
    %c0_i32_1 = arith.constant 0 : i32
    return %arg0, %c0_i32, %c0_i32_0 : i32, i32, i32
  }
  func.func @transform_1(%arg0: i32) -> (i32, i32, i32) {
    %c0_i32 = arith.constant 0 : i32
    %c0_i32_0 = arith.constant 0 : i32
    %c0_i32_1 = arith.constant 0 : i32
    %c0_i32_2 = arith.constant 0 : i32
    return %c0_i32, %c0_i32_0, %c0_i32_1 : i32, i32, i32
  }
  func.func @transform_2(%arg0: i32) -> (i32, i32) {
    %c0_i32 = arith.constant 0 : i32
    %c0_i32_0 = arith.constant 0 : i32
    %c0_i32_1 = arith.constant 0 : i32
    return %c0_i32, %c0_i32_0 : i32, i32
  }
  func.func @transform_3(%arg0: i32) -> (i32, i32, i32) {
    %c0_i32 = arith.constant 0 : i32
    %c0_i32_0 = arith.constant 0 : i32
    %c0_i32_1 = arith.constant 0 : i32
    return %arg0, %c0_i32, %c0_i32_0 : i32, i32, i32
  }
  func.func @transform_4(%arg0: i32) -> (i32, i32, i32) {
    %c0_i32 = arith.constant 0 : i32
    %c0_i32_0 = arith.constant 0 : i32
    %c0_i32_1 = arith.constant 0 : i32
    return %arg0, %c0_i32, %c0_i32_0 : i32, i32, i32
  }
  func.func @transform_5(%arg0: i32) -> (i32, i32, i32) {
    %c0_i32 = arith.constant 0 : i32
    %c0_i32_0 = arith.constant 0 : i32
    %c0_i32_1 = arith.constant 0 : i32
    return %arg0, %c0_i32, %c0_i32_0 : i32, i32, i32
  }
}

module attributes {stable_mosaic.version = 11 : i64} {
  func.func @bn_relu_kernel(%arg0: i32, %arg1: memref<32x128xf32, #tpu.memory_space<vmem>>, %arg2: memref<1x128xf32, #tpu.memory_space<vmem>>, %arg3: memref<1x128xf32, #tpu.memory_space<vmem>>, %arg4: memref<32x128xbf16, #tpu.memory_space<vmem>>) attributes {dimension_semantics = [#tpu.dimension_semantics<parallel>], iteration_bounds = array<i64: 1>, scalar_prefetch = 0 : i64, scratch_operands = 0 : i64, tpu.core_type = #tpu.core_type<tc>, window_params = [{transform_indices = @transform_0, window_bounds = array<i64: 32, 128>}, {pipeline_mode = #tpu.pipeline_mode<synchronous>, transform_indices = @transform_1, window_bounds = array<i64: 1, 128>}, {pipeline_mode = #tpu.pipeline_mode<synchronous>, transform_indices = @transform_2, window_bounds = array<i64: 1, 128>}, {transform_indices = @transform_3, window_bounds = array<i64: 32, 128>}]} {
    %c0 = arith.constant 0 : index
    %c0_0 = arith.constant 0 : index
    %0 = vector.load %arg1[%c0, %c0_0] : memref<32x128xf32, #tpu.memory_space<vmem>>, vector<32x128xf32>
    %c0_1 = arith.constant 0 : index
    %c0_2 = arith.constant 0 : index
    %1 = vector.load %arg2[%c0_1, %c0_2] : memref<1x128xf32, #tpu.memory_space<vmem>>, vector<1x128xf32>
    %2 = vector.broadcast %1 : vector<1x128xf32> to vector<32x128xf32>
    %3 = arith.mulf %0, %2 : vector<32x128xf32>
    %c0_3 = arith.constant 0 : index
    %c0_4 = arith.constant 0 : index
    %4 = vector.load %arg3[%c0_3, %c0_4] : memref<1x128xf32, #tpu.memory_space<vmem>>, vector<1x128xf32>
    %5 = vector.broadcast %4 : vector<1x128xf32> to vector<32x128xf32>
    %6 = arith.addf %3, %5 : vector<32x128xf32>
    %cst = arith.constant 0.000000e+00 : f32
    %7 = vector.broadcast %cst : f32 to vector<32x128xf32>
    %8 = arith.maximumf %6, %7 : vector<32x128xf32>
    %9 = arith.truncf %8 : vector<32x128xf32> to vector<32x128xbf16>
    %c0_5 = arith.constant 0 : index
    %c0_6 = arith.constant 0 : index
    %10 = vector.load %arg4[%c0_5, %c0_6] : memref<32x128xbf16, #tpu.memory_space<vmem>>, vector<32x128xbf16>
    tpu.vector_store %arg4[%c0_5, %c0_6], %9 {strides = array<i32>} : memref<32x128xbf16, #tpu.memory_space<vmem>>, vector<32x128xbf16>,
    return
  }
  func.func @transform_0(%arg0: i32) -> (i32, i32) {
    %c0_i32 = arith.constant 0 : i32
    %c0_i32_0 = arith.constant 0 : i32
    return %arg0, %c0_i32 : i32, i32
  }
  func.func @transform_1(%arg0: i32) -> (i32, i32) {
    %c0_i32 = arith.constant 0 : i32
    %c0_i32_0 = arith.constant 0 : i32
    %c0_i32_1 = arith.constant 0 : i32
    return %c0_i32, %c0_i32_0 : i32, i32
  }
  func.func @transform_2(%arg0: i32) -> (i32, i32) {
    %c0_i32 = arith.constant 0 : i32
    %c0_i32_0 = arith.constant 0 : i32
    %c0_i32_1 = arith.constant 0 : i32
    return %c0_i32, %c0_i32_0 : i32, i32
  }
  func.func @transform_3(%arg0: i32) -> (i32, i32) {
    %c0_i32 = arith.constant 0 : i32
    %c0_i32_0 = arith.constant 0 : i32
    return %arg0, %c0_i32 : i32, i32
  }
}

module attributes {stable_mosaic.version = 11 : i64} {
  func.func @conv_bias_stats_kernel(%arg0: i32, %arg1: memref<1x18x144xbf16, #tpu.memory_space<vmem>>, %arg2: memref<3x144x128xbf16, #tpu.memory_space<vmem>>, %arg3: memref<1x128xf32, #tpu.memory_space<vmem>>, %arg4: memref<1x16x128xf32, #tpu.memory_space<vmem>>, %arg5: memref<1x1x128xf32, #tpu.memory_space<vmem>>, %arg6: memref<1x1x128xf32, #tpu.memory_space<vmem>>) attributes {dimension_semantics = [#tpu.dimension_semantics<parallel>], iteration_bounds = array<i64: 2>, scalar_prefetch = 0 : i64, scratch_operands = 0 : i64, tpu.core_type = #tpu.core_type<tc>, window_params = [{transform_indices = @transform_0, window_bounds = array<i64: 1, 18, 144>}, {pipeline_mode = #tpu.pipeline_mode<synchronous>, transform_indices = @transform_1, window_bounds = array<i64: 3, 144, 128>}, {pipeline_mode = #tpu.pipeline_mode<synchronous>, transform_indices = @transform_2, window_bounds = array<i64: 1, 128>}, {transform_indices = @transform_3, window_bounds = array<i64: 1, 16, 128>}, {transform_indices = @transform_4, window_bounds = array<i64: 1, 1, 128>}, {transform_indices = @transform_5, window_bounds = array<i64: 1, 1, 128>}]} {
    %cst = arith.constant 0.000000e+00 : f32
    %0 = vector.broadcast %cst : f32 to vector<16x128xf32>
    %c0 = arith.constant 0 : index
    %c0_0 = arith.constant 0 : index
    %c0_1 = arith.constant 0 : index
    %1 = vector.load %arg1[%c0, %c0_0, %c0_1] : memref<1x18x144xbf16, #tpu.memory_space<vmem>>, vector<1x16x144xbf16>
    %2 = vector.shape_cast %1 : vector<1x16x144xbf16> to vector<16x144xbf16>
    %c0_2 = arith.constant 0 : index
    %c0_3 = arith.constant 0 : index
    %c0_4 = arith.constant 0 : index
    %3 = vector.load %arg2[%c0_2, %c0_3, %c0_4] : memref<3x144x128xbf16, #tpu.memory_space<vmem>>, vector<1x144x128xbf16>
    %4 = vector.shape_cast %3 : vector<1x144x128xbf16> to vector<144x128xbf16>
    %cst_5 = arith.constant dense<0.000000e+00> : vector<16x128xf32>
    %5 = tpu.matmul %2, %4, %cst_5 {dimension_numbers = #tpu.dot_dimension_numbers<[1], [0], [0], [1], [0, 0, 1, 1], [], []>} : vector<16x144xbf16>, vector<144x128xbf16>, vector<16x128xf32> -> vector<16x128xf32>
    %6 = arith.addf %0, %5 : vector<16x128xf32>
    %c0_6 = arith.constant 0 : index
    %c1 = arith.constant 1 : index
    %c0_7 = arith.constant 0 : index
    %7 = vector.load %arg1[%c0_6, %c1, %c0_7] : memref<1x18x144xbf16, #tpu.memory_space<vmem>>, vector<1x16x144xbf16>
    %8 = vector.shape_cast %7 : vector<1x16x144xbf16> to vector<16x144xbf16>
    %c1_8 = arith.constant 1 : index
    %c0_9 = arith.constant 0 : index
    %c0_10 = arith.constant 0 : index
    %9 = vector.load %arg2[%c1_8, %c0_9, %c0_10] : memref<3x144x128xbf16, #tpu.memory_space<vmem>>, vector<1x144x128xbf16>
    %10 = vector.shape_cast %9 : vector<1x144x128xbf16> to vector<144x128xbf16>
    %cst_11 = arith.constant dense<0.000000e+00> : vector<16x128xf32>
    %11 = tpu.matmul %8, %10, %cst_11 {dimension_numbers = #tpu.dot_dimension_numbers<[1], [0], [0], [1], [0, 0, 1, 1], [], []>} : vector<16x144xbf16>, vector<144x128xbf16>, vector<16x128xf32> -> vector<16x128xf32>
    %12 = arith.addf %6, %11 : vector<16x128xf32>
    %c0_12 = arith.constant 0 : index
    %c2 = arith.constant 2 : index
    %c0_13 = arith.constant 0 : index
    %13 = vector.load %arg1[%c0_12, %c2, %c0_13] : memref<1x18x144xbf16, #tpu.memory_space<vmem>>, vector<1x16x144xbf16>
    %14 = vector.shape_cast %13 : vector<1x16x144xbf16> to vector<16x144xbf16>
    %c2_14 = arith.constant 2 : index
    %c0_15 = arith.constant 0 : index
    %c0_16 = arith.constant 0 : index
    %15 = vector.load %arg2[%c2_14, %c0_15, %c0_16] : memref<3x144x128xbf16, #tpu.memory_space<vmem>>, vector<1x144x128xbf16>
    %16 = vector.shape_cast %15 : vector<1x144x128xbf16> to vector<144x128xbf16>
    %cst_17 = arith.constant dense<0.000000e+00> : vector<16x128xf32>
    %17 = tpu.matmul %14, %16, %cst_17 {dimension_numbers = #tpu.dot_dimension_numbers<[1], [0], [0], [1], [0, 0, 1, 1], [], []>} : vector<16x144xbf16>, vector<144x128xbf16>, vector<16x128xf32> -> vector<16x128xf32>
    %18 = arith.addf %12, %17 : vector<16x128xf32>
    %c0_18 = arith.constant 0 : index
    %c0_19 = arith.constant 0 : index
    %19 = vector.load %arg3[%c0_18, %c0_19] : memref<1x128xf32, #tpu.memory_space<vmem>>, vector<1x128xf32>
    %20 = vector.broadcast %19 : vector<1x128xf32> to vector<16x128xf32>
    %21 = arith.addf %18, %20 : vector<16x128xf32>
    %c0_20 = arith.constant 0 : index
    %c0_21 = arith.constant 0 : index
    %c0_22 = arith.constant 0 : index
    %22 = vector.load %arg4[%c0_20, %c0_21, %c0_22] : memref<1x16x128xf32, #tpu.memory_space<vmem>>, vector<1x16x128xf32>
    %23 = vector.shape_cast %22 : vector<1x16x128xf32> to vector<16x128xf32>
    %24 = vector.shape_cast %21 : vector<16x128xf32> to vector<1x16x128xf32>
    tpu.vector_store %arg4[%c0_20, %c0_21, %c0_22], %24 {strides = array<i32>} : memref<1x16x128xf32, #tpu.memory_space<vmem>>, vector<1x16x128xf32>,
    %cst_23 = arith.constant dense<0.000000e+00> : vector<128xf32>
    %25 = vector.multi_reduction <add>, %21, %cst_23 [0] : vector<16x128xf32> to vector<128xf32>
    %26 = vector.shape_cast %25 : vector<128xf32> to vector<1x128xf32>
    %c0_24 = arith.constant 0 : index
    %c0_25 = arith.constant 0 : index
    %c0_26 = arith.constant 0 : index
    %27 = vector.load %arg5[%c0_24, %c0_25, %c0_26] : memref<1x1x128xf32, #tpu.memory_space<vmem>>, vector<1x1x128xf32>
    %28 = vector.shape_cast %27 : vector<1x1x128xf32> to vector<1x128xf32>
    %29 = vector.shape_cast %26 : vector<1x128xf32> to vector<1x1x128xf32>
    tpu.vector_store %arg5[%c0_24, %c0_25, %c0_26], %29 {strides = array<i32>} : memref<1x1x128xf32, #tpu.memory_space<vmem>>, vector<1x1x128xf32>,
    %30 = arith.mulf %21, %21 : vector<16x128xf32>
    %cst_27 = arith.constant dense<0.000000e+00> : vector<128xf32>
    %31 = vector.multi_reduction <add>, %30, %cst_27 [0] : vector<16x128xf32> to vector<128xf32>
    %32 = vector.shape_cast %31 : vector<128xf32> to vector<1x128xf32>
    %c0_28 = arith.constant 0 : index
    %c0_29 = arith.constant 0 : index
    %c0_30 = arith.constant 0 : index
    %33 = vector.load %arg6[%c0_28, %c0_29, %c0_30] : memref<1x1x128xf32, #tpu.memory_space<vmem>>, vector<1x1x128xf32>
    %34 = vector.shape_cast %33 : vector<1x1x128xf32> to vector<1x128xf32>
    %35 = vector.shape_cast %32 : vector<1x128xf32> to vector<1x1x128xf32>
    tpu.vector_store %arg6[%c0_28, %c0_29, %c0_30], %35 {strides = array<i32>} : memref<1x1x128xf32, #tpu.memory_space<vmem>>, vector<1x1x128xf32>,
    return
  }
  func.func @transform_0(%arg0: i32) -> (i32, i32, i32) {
    %c0_i32 = arith.constant 0 : i32
    %c0_i32_0 = arith.constant 0 : i32
    %c0_i32_1 = arith.constant 0 : i32
    return %arg0, %c0_i32, %c0_i32_0 : i32, i32, i32
  }
  func.func @transform_1(%arg0: i32) -> (i32, i32, i32) {
    %c0_i32 = arith.constant 0 : i32
    %c0_i32_0 = arith.constant 0 : i32
    %c0_i32_1 = arith.constant 0 : i32
    %c0_i32_2 = arith.constant 0 : i32
    return %c0_i32, %c0_i32_0, %c0_i32_1 : i32, i32, i32
  }
  func.func @transform_2(%arg0: i32) -> (i32, i32) {
    %c0_i32 = arith.constant 0 : i32
    %c0_i32_0 = arith.constant 0 : i32
    %c0_i32_1 = arith.constant 0 : i32
    return %c0_i32, %c0_i32_0 : i32, i32
  }
  func.func @transform_3(%arg0: i32) -> (i32, i32, i32) {
    %c0_i32 = arith.constant 0 : i32
    %c0_i32_0 = arith.constant 0 : i32
    %c0_i32_1 = arith.constant 0 : i32
    return %arg0, %c0_i32, %c0_i32_0 : i32, i32, i32
  }
  func.func @transform_4(%arg0: i32) -> (i32, i32, i32) {
    %c0_i32 = arith.constant 0 : i32
    %c0_i32_0 = arith.constant 0 : i32
    %c0_i32_1 = arith.constant 0 : i32
    return %arg0, %c0_i32, %c0_i32_0 : i32, i32, i32
  }
  func.func @transform_5(%arg0: i32) -> (i32, i32, i32) {
    %c0_i32 = arith.constant 0 : i32
    %c0_i32_0 = arith.constant 0 : i32
    %c0_i32_1 = arith.constant 0 : i32
    return %arg0, %c0_i32, %c0_i32_0 : i32, i32, i32
  }
}

module attributes {stable_mosaic.version = 11 : i64} {
  func.func @bn_relu_kernel(%arg0: i32, %arg1: memref<32x128xf32, #tpu.memory_space<vmem>>, %arg2: memref<1x128xf32, #tpu.memory_space<vmem>>, %arg3: memref<1x128xf32, #tpu.memory_space<vmem>>, %arg4: memref<32x128xf32, #tpu.memory_space<vmem>>) attributes {dimension_semantics = [#tpu.dimension_semantics<parallel>], iteration_bounds = array<i64: 1>, scalar_prefetch = 0 : i64, scratch_operands = 0 : i64, tpu.core_type = #tpu.core_type<tc>, window_params = [{transform_indices = @transform_0, window_bounds = array<i64: 32, 128>}, {pipeline_mode = #tpu.pipeline_mode<synchronous>, transform_indices = @transform_1, window_bounds = array<i64: 1, 128>}, {pipeline_mode = #tpu.pipeline_mode<synchronous>, transform_indices = @transform_2, window_bounds = array<i64: 1, 128>}, {transform_indices = @transform_3, window_bounds = array<i64: 32, 128>}]} {
    %c0 = arith.constant 0 : index
    %c0_0 = arith.constant 0 : index
    %0 = vector.load %arg1[%c0, %c0_0] : memref<32x128xf32, #tpu.memory_space<vmem>>, vector<32x128xf32>
    %c0_1 = arith.constant 0 : index
    %c0_2 = arith.constant 0 : index
    %1 = vector.load %arg2[%c0_1, %c0_2] : memref<1x128xf32, #tpu.memory_space<vmem>>, vector<1x128xf32>
    %2 = vector.broadcast %1 : vector<1x128xf32> to vector<32x128xf32>
    %3 = arith.mulf %0, %2 : vector<32x128xf32>
    %c0_3 = arith.constant 0 : index
    %c0_4 = arith.constant 0 : index
    %4 = vector.load %arg3[%c0_3, %c0_4] : memref<1x128xf32, #tpu.memory_space<vmem>>, vector<1x128xf32>
    %5 = vector.broadcast %4 : vector<1x128xf32> to vector<32x128xf32>
    %6 = arith.addf %3, %5 : vector<32x128xf32>
    %cst = arith.constant 0.000000e+00 : f32
    %7 = vector.broadcast %cst : f32 to vector<32x128xf32>
    %8 = arith.maximumf %6, %7 : vector<32x128xf32>
    %c0_5 = arith.constant 0 : index
    %c0_6 = arith.constant 0 : index
    %9 = vector.load %arg4[%c0_5, %c0_6] : memref<32x128xf32, #tpu.memory_space<vmem>>, vector<32x128xf32>
    tpu.vector_store %arg4[%c0_5, %c0_6], %8 {strides = array<i32>} : memref<32x128xf32, #tpu.memory_space<vmem>>, vector<32x128xf32>,
    return
  }
  func.func @transform_0(%arg0: i32) -> (i32, i32) {
    %c0_i32 = arith.constant 0 : i32
    %c0_i32_0 = arith.constant 0 : i32
    return %arg0, %c0_i32 : i32, i32
  }
  func.func @transform_1(%arg0: i32) -> (i32, i32) {
    %c0_i32 = arith.constant 0 : i32
    %c0_i32_0 = arith.constant 0 : i32
    %c0_i32_1 = arith.constant 0 : i32
    return %c0_i32, %c0_i32_0 : i32, i32
  }
  func.func @transform_2(%arg0: i32) -> (i32, i32) {
    %c0_i32 = arith.constant 0 : i32
    %c0_i32_0 = arith.constant 0 : i32
    %c0_i32_1 = arith.constant 0 : i32
    return %c0_i32, %c0_i32_0 : i32, i32
  }
  func.func @transform_3(%arg0: i32) -> (i32, i32) {
    %c0_i32 = arith.constant 0 : i32
    %c0_i32_0 = arith.constant 0 : i32
    return %arg0, %c0_i32 : i32, i32
  }
}

</mosaic_0001>

<bundles_post_ra>
// kernel: tile.33
= control target key start
LH: loop header
LB: loop body
LE: loop exit
PB: predicated region body
PF: predicated region fallthrough
CT: control target
= control target key end

     0   :  { %s28_s0 = inlined_call_operand.vmem [shape: f32[8], index: 0, kind: input, shape index: {}]   ;;  %s29_s1 = inlined_call_operand.vmem [shape: f32[16,8], index: 1, kind: output, shape index: {}]  }
   0x1   :  { %v4_v0 = vld [vmem:[%s28_s0] ss:$0 sm:$0xff] }
   0x2   :  { %5 = vst [vmem:[%s29_s1] sm:$0xff] %v4_v0  ;;  %8 = vst [vmem:[%s29_s1 + $0x8] sm:$0xff] %v4_v0 }

// kernel: tile.34
= control target key start
LH: loop header
LB: loop body
LE: loop exit
PB: predicated region body
PF: predicated region fallthrough
CT: control target
= control target key end

     0   :  { %s133_s10 = smov 120   ;;  %s134_s11 = smov 104   ;;  %vm3_vm0 = vcmask 64512   ;;  %vm9_vm1 = vcmask 1048512   ;;  %vm15_vm2 = vcmask 982912   ;;  %vm21_vm3 = vcmask 917312   ;;  %s209_s0 = inlined_call_operand.vmem [shape: f32[16,8], index: 0, kind: input, shape index: {}]   ;;  %s210_s1 = inlined_call_operand.vmem [shape: f32[1,128], index: 1, kind: output, shape index: {}]  }
   0x1   :  { %v103_v0 = vld [vmem:[%s209_s0 + $0xf] sm:$0x1]   ;;  %v105_v1 = vld [vmem:[%s209_s0 + $0xd] sm:$0x1]   ;;  %v104_v2 = vld [vmem:[%s209_s0 + $0xe] sm:$0x1]  }
   0x2   :  { %7 = vrot.lane.b32.xlu0 %v103_v0, %s133_s10  ;;  %19 = vrot.lane.b32.xlu1 %v105_v1, %s134_s11  ;;  %v106_v3 = vld [vmem:[%s209_s0 + $0xc] sm:$0x1]   ;;  %s135_s16 = smov 112   ;;  %s136_s17 = smov 96   ;;  %v107_v4 = vld [vmem:[%s209_s0 + $0xb] sm:$0x1]  }
   0x3   :  { %v108_v5 = vld [vmem:[%s209_s0 + $0xa] sm:$0x1]   ;;  %v2_v6 = vld [vmem:[%s209_s0] sm:$0x1]   ;;  %s137_s24 = smov 88   ;;  %s138_s25 = smov 80  }
   0x4   :  { %4 = vst.msk [vmem:[#allocation0] sm:$0x1] %vm3_vm0, %v2_v6   ;;  %v109_v7 = vld [vmem:[%s209_s0 + $0x9] sm:$0x1]   ;;  %v110_v8 = vld [vmem:[%s209_s0 + $0x8] sm:$0x1]  }
   0x5   :  { %s139_s30 = smov 72   ;;  %s140_s2 = smov 64   ;;  %v111_v9 = vld [vmem:[%s209_s0 + $0x7] sm:$0x1]   ;;  %v112_v10 = vld [vmem:[%s209_s0 + $0x6] sm:$0x1]  }
   0x6   :  { %13 = vrot.lane.b32.xlu0 %v104_v2, %s135_s16  ;;  %25 = vrot.lane.b32.xlu1 %v106_v3, %s136_s17  ;;  %s141_s7 = smov 56   ;;  %s142_s8 = smov 48   ;;  %v113_v11 = vld [vmem:[%s209_s0 + $0x5] sm:$0x1]   ;;  %v114_v12 = vld [vmem:[%s209_s0 + $0x4] sm:$0x1]  }
   0x7   :  { %s143_s13 = smov 40   ;;  %s144_s14 = smov 32   ;;  %v115_v13 = vld [vmem:[%s209_s0 + $0x3] sm:$0x1]   ;;  %v116_v14 = vld [vmem:[%s209_s0 + $0x2] sm:$0x1]  }
   0x8   :  { %s145_s19 = smov 24   ;;  %s146_s20 = smov 16   ;;  %v117_v15 = vld [vmem:[%s209_s0 + $0x1] sm:$0x1]   ;;  %vm27_vm4 = vcmask 851712   ;;  %vm33_vm5 = vcmask 786112  }
   0x9   :  { %s147_s0 = smov 8   ;;  %vm39_vm6 = vcmask 720512   ;;  %vm45_vm7 = vcmask 654912   ;;  %vm51_vm8 = vcmask 589312   ;;  %vm57_vm9 = vcmask 523712  }
   0xa   :  { %31 = vrot.lane.b32.xlu0 %v107_v4, %s137_s24  ;;  %37 = vrot.lane.b32.xlu1 %v108_v5, %s138_s25  ;;  %vm63_vm10 = vcmask 458112   ;;  %vm69_vm11 = vcmask 392512   ;;  %vm75_vm12 = vcmask 326912   ;;  %vm81_vm13 = vcmask 261312  }
   0xb   :  { %vm87_vm14 = vcmask 195712   ;;  %vm93_vm15 = vcmask 130112  }
   0xe   :  { %43 = vrot.lane.b32.xlu0 %v109_v7, %s139_s30  ;;  %49 = vrot.lane.b32.xlu1 %v110_v8, %s140_s2 }
  0x12   :  { %55 = vrot.lane.b32.xlu0 %v111_v9, %s141_s7  ;;  %61 = vrot.lane.b32.xlu1 %v112_v10, %s142_s8 }
  0x16   :  { %67 = vrot.lane.b32.xlu0 %v113_v11, %s143_s13  ;;  %73 = vrot.lane.b32.xlu1 %v114_v12, %s144_s14 }
  0x1a   :  { %79 = vrot.lane.b32.xlu0 %v115_v13, %s145_s19  ;;  %85 = vrot.lane.b32.xlu1 %v116_v14, %s146_s20 }
  0x1e   :  { %91 = vrot.lane.b32.xlu0 %v117_v15, %s147_s0 }
  0x74   :  { %v8_v16 = vpop.permute.xlu0 %7   ;;  %v20_v17 = vpop.permute.xlu1 %19  }
  0x75   :  { %10 = vst.msk [vmem:[#allocation0] sm:$0x1] %vm9_vm1, %v8_v16  }
  0x78   :  { %v14_v18 = vpop.permute.xlu0 %13   ;;  %v26_v19 = vpop.permute.xlu1 %25  }
  0x79   :  { %16 = vst.msk [vmem:[#allocation0] sm:$0x1] %vm15_vm2, %v14_v18  }
  0x7a   :  { %22 = vst.msk [vmem:[#allocation0] sm:$0x1] %vm21_vm3, %v20_v17  }
  0x7b   :  { %28 = vst.msk [vmem:[#allocation0] sm:$0x1] %vm27_vm4, %v26_v19  }
  0x7c   :  { %v32_v20 = vpop.permute.xlu0 %31   ;;  %v38_v21 = vpop.permute.xlu1 %37  }
  0x7d   :  { %34 = vst.msk [vmem:[#allocation0] sm:$0x1] %vm33_vm5, %v32_v20  }
  0x7e   :  { %40 = vst.msk [vmem:[#allocation0] sm:$0x1] %vm39_vm6, %v38_v21  }
  0x80   :  { %v44_v22 = vpop.permute.xlu0 %43   ;;  %v50_v23 = vpop.permute.xlu1 %49  }
  0x81   :  { %46 = vst.msk [vmem:[#allocation0] sm:$0x1] %vm45_vm7, %v44_v22  }
  0x82   :  { %52 = vst.msk [vmem:[#allocation0] sm:$0x1] %vm51_vm8, %v50_v23  }
  0x84   :  { %v56_v24 = vpop.permute.xlu0 %55   ;;  %v62_v25 = vpop.permute.xlu1 %61  }
  0x85   :  { %58 = vst.msk [vmem:[#allocation0] sm:$0x1] %vm57_vm9, %v56_v24  }
  0x86   :  { %64 = vst.msk [vmem:[#allocation0] sm:$0x1] %vm63_vm10, %v62_v25  }
  0x88   :  { %v68_v26 = vpop.permute.xlu0 %67   ;;  %v74_v27 = vpop.permute.xlu1 %73  }
  0x89   :  { %70 = vst.msk [vmem:[#allocation0] sm:$0x1] %vm69_vm11, %v68_v26  }
  0x8a   :  { %76 = vst.msk [vmem:[#allocation0] sm:$0x1] %vm75_vm12, %v74_v27  }
  0x8c   :  { %v80_v28 = vpop.permute.xlu0 %79   ;;  %v86_v29 = vpop.permute.xlu1 %85  }
  0x8d   :  { %82 = vst.msk [vmem:[#allocation0] sm:$0x1] %vm81_vm13, %v80_v28  }
  0x8e   :  { %88 = vst.msk [vmem:[#allocation0] sm:$0x1] %vm87_vm14, %v86_v29  }
  0x90   :  { %v92_v30 = vpop.permute.xlu0 %91  }
  0x91   :  { %94 = vst.msk [vmem:[#allocation0] sm:$0x1] %vm93_vm15, %v92_v30  }
  0x98   :  { %v99_v31 = vld [vmem:[#allocation0] sm:$0x1] }
  0x99   :  { %102 = vst [vmem:[%s210_s1] sm:$0x1] %v99_v31 }

// kernel: conv_block_forward.4
= control target key start
LH: loop header
LB: loop body
LE: loop exit
PB: predicated region body
PF: predicated region fallthrough
CT: control target
= control target key end

     0   :  { %s843_s18 = smov 0   ;;  %s953_s0 = inlined_call_operand.vmem [shape: bf16[2,18,72], index: 0, kind: input, shape index: {}]   ;;  %s954_s1 = inlined_call_operand.vmem [shape: bf16[3,72,128], index: 1, kind: input, shape index: {}]   ;;  %s955_s2 = inlined_call_operand.vmem [shape: f32[1,128], index: 2, kind: input, shape index: {}]   ;;  %s956_s3 = inlined_call_operand.vmem [shape: f32[2,16,128], index: 3, kind: output, shape index: {0}]   ;;  %s957_s4 = inlined_call_operand.vmem [shape: f32[2,1,128], index: 4, kind: output, shape index: {1}]   ;;  %s958_s5 = inlined_call_operand.vmem [shape: f32[2,1,128], index: 5, kind: output, shape index: {2}]  }
   0x1 LB: > { %s663_s19 = sadd.s32 4294967295, %s809_s18   ;;  %p667_p0 = scmp.ge.s32.totalorder %s809_s18, 1  ;;  %s809_s18 = sphi %s843_s18, %s16_s18  }
   0x2   : > { %p192_p1 = scmp.lt.s32.totalorder %s809_s18, 3 }
   0x4   : > { %p193_p2 = pnand %p667_p0, %p192_p1 }
   0x5   : > { %p226_p3 = scmp.lt.s32.totalorder (!%p193_p2), %s663_s19, 1 }
   0x6   : > { %196 = sbr.rel (%p193_p2) target bundleno = 270 (0x10e), region = 32 }
   0xb   : > { %v785_v0 = vld [vmem:[%s954_s1 + $0x44] ss:$0 sps:$4 sm:$0xff]   ;;  %vm317_vm0 = vcmask 1043456   ;;  %v811_v1 = vmov 0.0   ;;  %v786_v2 = vld [vmem:[%s954_s1 + $0x20] ss:$0 sps:$4 sm:$0xff]  }
   0xc   : > { %732 = vmatprep.subr.bf16.mxu0 %v811_v1  ;;  %746 = vmatprep.subr.bf16.mxu1 %v811_v1  ;;  %v319_v3 = vsel %vm317_vm0, %v785_v0, 0  ;;  %v392_v4 = vsel %vm317_vm0, %v786_v2, 0  ;;  %v787_v5 = vld [vmem:[%s954_s1 + $0x3c] sm:$0xff]   ;;  %vm812_vm1 = vmmov 0   ;;  %v789_v7 = vld [vmem:[%s954_s1 + $0x34] sm:$0xff]   ;;  %s960_s19 = smov (!%p226_p3, %s663_s19), 1 }
   0xd   : > { %733 = vmatpush3.bf16.msra.mxu0 %v319_v3  ;;  %747 = vmatpush3.bf16.msra.mxu1 %v392_v4  ;;  %v788_v6 = vld [vmem:[%s954_s1 + $0x18] sm:$0xff]   ;;  %v790_v8 = vld [vmem:[%s954_s1 + $0x10] sm:$0xff]   ;;  %s774_s7 = smul.u32 12, %s960_s19  ;;  %v792_v10 = vld [vmem:[%s954_s1 + $0x8] sm:$0xff]   ;;  %vm273_vm2 = vsmask.f32 7424  ;;  %s241_s17 = scalar_lea.vmem %s958_s5, %s960_s19 }
   0xe   : > { %734 = vmatprep.subr.bf16.mxu0 %v811_v1  ;;  %748 = vmatprep.subr.bf16.mxu1 %v811_v1  ;;  %v791_v9 = vld [vmem:[%s954_s1 + $0x2c] sm:$0xff]   ;;  %v793_v15 = vld [vmem:[%s954_s1 + $0x24] sm:$0xff]   ;;  %vm313_vm3 = vcmask 588800   ;;  %v799_v27 = vld [vmem:[%s954_s1 + $0x58] sm:$0xff]   ;;  %vm449_vm4 = vcmask 1046528   ;;  %s713_s6 = sshll.u32 %s960_s19, 4 }
   0xf   : > { %742 = vmatprep.mubr.msk.bf16.mxu0 %vm812_vm1, %v811_v1  ;;  %756 = vmatprep.mubr.msk.bf16.mxu1 %vm812_vm1, %v811_v1  ;;  %s893_s14 = scalar_lea.vmem %s953_s0, %s774_s7  ;;  %v794_v19 = vld [vmem:[%s954_s1] sm:$0xff]   ;;  %v797_v20 = vld [vmem:[%s954_s1 + $0x68] ss:$0 sps:$4 sm:$0xff]   ;;  %v800_v29 = vld [vmem:[%s954_s1 + $0x50] sm:$0xff]   ;;  %s235_s11 = scalar_lea.vmem %s956_s3, %s713_s6 }
  0x10   : > { %v243_v11 = vld [vmem:[%s893_s14] sm:$0xf]  ;;  %v244_v12 = vld [vmem:[%s893_s14 + $0x4] sm:$0xf]  ;;  %v484_v24 = vsel %vm317_vm0, %v797_v20, 0  ;;  %v801_v31 = vld [vmem:[%s954_s1 + $0x48] sm:$0xff]  }
  0x11   : > { %735 = vmatpush3.bf16.msra.mxu0 %v787_v5  ;;  %749 = vmatpush3.bf16.msra.mxu1 %v788_v6  ;;  %v680_v13 = vcombine.low %v243_v11, %v244_v12  ;;  %v796_v14 = vld [vmem:[%s893_s14 + $0x8] ss:$0 sps:$4 sm:$0x11]   ;;  %v798_v26 = vld [vmem:[%s954_s1 + $0x60] sm:$0xff]  }
  0x12   : > { %736 = vmatprep.subr.bf16.mxu0 %v811_v1  ;;  %750 = vmatprep.subr.bf16.mxu1 %v811_v1  ;;  %v282_v18 = vshll.u32 %v796_v14, 16  ;;  %v435_v28 = vld [vmem:[%s893_s14] sm:$0xe]  ;;  %v451_v33 = vrot.slane %v796_v14, 1  ;;  %v710_v45 = vld [vmem:[%s955_s2] ss:$0 sm:$0xff]  ;;  %s238_s14 = scalar_lea.vmem %s957_s4, %s960_s19 }
  0x13   : > { %v275_v16 = vshrl.u32 %v680_v13, 16  ;;  %v277_v17 = vshll.u32 %v680_v13, 16  ;;  %v703_v30 = vcombine.low %v435_v28, %v244_v12 }
  0x14   : > { %v284_v22 = vrot.slane %v282_v18, 1 }
  0x15   : > { %737 = vmatpush3.bf16.msra.mxu0 %v789_v7  ;;  %751 = vmatpush3.bf16.msra.mxu1 %v790_v8  ;;  %v279_v21 = vrot.slane %v277_v17, 1  ;;  %v450_v32 = vrot.slane %v703_v30, 1 }
  0x16   : > { %738 = vmatprep.subr.bf16.mxu0 %v811_v1  ;;  %752 = vmatprep.subr.bf16.mxu1 %v811_v1 }
  0x17   : > { %v280_v23 = vor.u32 %v279_v21, %v275_v16  ;;  %v452_v34 = vsel %vm449_vm4, %v450_v32, %v451_v33 }
  0x19   : > { %739 = vmatpush3.bf16.msra.mxu0 %v791_v9  ;;  %753 = vmatpush3.bf16.msra.mxu1 %v792_v10  ;;  %v285_v25 = vsel %vm273_vm2, %v280_v23, %v284_v22 }
  0x1a   : > { %740 = vmatprep.subr.bf16.mxu0 %v811_v1  ;;  %754 = vmatprep.subr.bf16.mxu1 %v811_v1 }
  0x1d   : > { %741 = vmatpush3.bf16.msra.mxu0 %v793_v15  ;;  %755 = vmatpush3.bf16.msra.mxu1 %v794_v19 }
  0x1e   : > { %760 = vmatprep.subr.bf16.mxu0 %v811_v1 }
  0x20   : > { %743 = vmatmul.mubr.msk.bf16.vlgmr.msra.gmra.mxu0 %vm313_vm3, %v285_v25  ;;  %757 = vmatmul.mubr.msk.bf16.vlgmr.msra.gmra.mxu1 %vm313_vm3, %v680_v13 }
  0x21   : > { %761 = vmatpush3.bf16.msra.mxu0 %v484_v24  ;;  %770 = vmatprep.mubr.msk.bf16.mxu0 %vm812_vm1, %v811_v1 }
  0x22   : > { %762 = vmatprep.subr.bf16.mxu0 %v811_v1 }
  0x25   : > { %763 = vmatpush3.bf16.msra.mxu0 %v798_v26 }
  0x26   : > { %764 = vmatprep.subr.bf16.mxu0 %v811_v1 }
  0x29   : > { %765 = vmatpush3.bf16.msra.mxu0 %v799_v27 }
  0x2a   : > { %766 = vmatprep.subr.bf16.mxu0 %v811_v1 }
  0x2d   : > { %767 = vmatpush3.bf16.msra.mxu0 %v800_v29 }
  0x2e   : > { %768 = vmatprep.subr.bf16.mxu0 %v811_v1 }
  0x31   : > { %769 = vmatpush3.bf16.msra.mxu0 %v801_v31 }
  0x34   : > { %771 = vmatmul.mubr.msk.bf16.vlgmr.msra.gmra.mxu0 %vm313_vm3, %v452_v34 }
  0xe0   : > { %v355_v35 = vpop.f32.mrf.mxu0  ;;  %v428_v36 = vpop.f32.mrf.mxu1 }
  0xe1   : > { %v429_v43 = vadd.f32 %v428_v36, %v355_v35 }
  0xe2   : > { %v744_v37 = vpop.f32.mrf.mxu0  ;;  %v758_v38 = vpop.f32.mrf.mxu1 }
  0xe4   : > { %v358_v39 = vpop.f32.mrf.mxu0  ;;  %v431_v40 = vpop.f32.mrf.mxu1 }
  0xe5   : > { %v432_v48 = vadd.f32 %v431_v40, %v358_v39 }
  0xe6   : > { %v745_v41 = vpop.f32.mrf.mxu0  ;;  %v759_v42 = vpop.f32.mrf.mxu1 }
  0xf4   : > { %v520_v44 = vpop.f32.mrf.mxu0 }
  0xf5   : > { %v527_v46 = vadd.f32 %v520_v44, %v429_v43 }
  0xf6   : > { %v772_v47 = vpop.f32.mrf.mxu0 }
  0xf7   : > { %v536_v49 = vadd.f32 %v710_v45, %v527_v46 }
  0xf8   : > { %v523_v50 = vpop.f32.mrf.mxu0 }
  0xf9   : > { %538 = vst [vmem:[%s235_s11] sm:$0xff] %v536_v49  ;;  %v528_v51 = vadd.f32 %v523_v50, %v432_v48  ;;  %v548_v54 = vmul.f32 %v536_v49, %v536_v49 }
  0xfa   : > { %v773_v52 = vpop.f32.mrf.mxu0 }
  0xfb   : > { %v537_v53 = vadd.f32 %v710_v45, %v528_v51 }
  0xfd   : > { %539 = vst [vmem:[%s235_s11 + $0x8] sm:$0xff] %v537_v53  ;;  %v540_v55 = vadd.f32 %v537_v53, %v536_v49  ;;  %v549_v56 = vmul.f32 %v537_v53, %v537_v53 }
  0xff   : > { %v541_v57 = vrot.slane %v540_v55, 4  ;;  %v550_v58 = vadd.f32 %v549_v56, %v548_v54 }
 0x101   : > { %v542_v59 = vadd.f32 %v541_v57, %v540_v55  ;;  %v551_v60 = vrot.slane %v550_v58, 4 }
 0x103   : > { %v543_v61 = vrot.slane %v542_v59, 2  ;;  %v552_v62 = vadd.f32 %v551_v60, %v550_v58 }
 0x105   : > { %v544_v63 = vadd.f32 %v543_v61, %v542_v59  ;;  %v553_v0 = vrot.slane %v552_v62, 2 }
 0x107   : > { %v545_v1 = vrot.slane %v544_v63, 1  ;;  %v554_v2 = vadd.f32 %v553_v0, %v552_v62 }
 0x109   : > { %v546_v3 = vadd.f32 %v545_v1, %v544_v63  ;;  %v555_v4 = vrot.slane %v554_v2, 1 }
 0x10b   : > { %547 = vst [vmem:[%s238_s14] sm:$0x1] %v546_v3  ;;  %v556_v5 = vadd.f32 %v555_v4, %v554_v2 }
 0x10d   : > { %557 = vst [vmem:[%s241_s17] sm:$0x1] %v556_v5 }
 0x10e PF: > { %s16_s18 = sadd.s32 1, %s809_s18  }
 0x10f   : > { %p13_p4 = scmp.ge.s32.totalorder %s16_s18, 4  }
 0x111   :  { %15 = sbr.rel (!%p13_p4) target bundleno = 1 (0x1), region = 88 }

// kernel: conv_block_forward.5
= control target key start
LH: loop header
LB: loop body
LE: loop exit
PB: predicated region body
PF: predicated region fallthrough
CT: control target
= control target key end

     0   :  { %s133_s0 = inlined_call_operand.vmem [shape: f32[32,128], index: 0, kind: input, shape index: {}]   ;;  %s134_s1 = inlined_call_operand.vmem [shape: f32[1,128], index: 1, kind: input, shape index: {}]   ;;  %s135_s2 = inlined_call_operand.vmem [shape: f32[1,128], index: 2, kind: input, shape index: {}]   ;;  %s136_s3 = inlined_call_operand.vmem [shape: bf16[32,128], index: 3, kind: output, shape index: {}]  }
   0x1   :  { %v14_v0 = vld [vmem:[%s133_s0] sm:$0xff]  ;;  %v15_v1 = vld [vmem:[%s133_s0 + $0x8] sm:$0xff]  ;;  %v16_v6 = vld [vmem:[%s133_s0 + $0x10] sm:$0xff] }
   0x2   :  { %v68_v2 = vld [vmem:[%s134_s1] ss:$0 sm:$0xff]  ;;  %v17_v7 = vld [vmem:[%s133_s0 + $0x18] sm:$0xff] }
   0x3   :  { %v25_v3 = vmul.f32 %v68_v2, %v14_v0  ;;  %v26_v4 = vmul.f32 %v68_v2, %v15_v1  ;;  %v69_v5 = vld [vmem:[%s135_s2] ss:$0 sm:$0xff]  ;;  %v27_v8 = vmul.f32 %v68_v2, %v16_v6  ;;  %v28_v9 = vmul.f32 %v68_v2, %v17_v7 }
   0x5   :  { %v36_v10 = vadd.f32 %v69_v5, %v25_v3  ;;  %v37_v11 = vadd.f32 %v69_v5, %v26_v4  ;;  %v38_v12 = vadd.f32 %v69_v5, %v27_v8  ;;  %v39_v13 = vadd.f32 %v69_v5, %v28_v9 }
   0x7   :  { %v40_v14 = vmax.f32 %v36_v10, 0.0  ;;  %v41_v15 = vmax.f32 %v37_v11, 0.0  ;;  %v42_v16 = vmax.f32 %v38_v12, 0.0  ;;  %v43_v17 = vmax.f32 %v39_v13, 0.0 }
   0x9   :  { %v81_v18 = vpack.c.bf16 %v41_v15, %v40_v14  ;;  %v86_v19 = vpack.c.bf16 %v43_v17, %v42_v16 }
   0xb   :  { %82 = vst [vmem:[%s136_s3] sm:$0xff] %v81_v18   ;;  %88 = vst [vmem:[%s136_s3 + $0x8] sm:$0xff] %v86_v19  }

// kernel: conv_block_forward.6
= control target key start
LH: loop header
LB: loop body
LE: loop exit
PB: predicated region body
PF: predicated region fallthrough
CT: control target
= control target key end

     0   :  { %s952_s18 = smov 0   ;;  %s1115_s0 = inlined_call_operand.vmem [shape: bf16[2,18,144], index: 0, kind: input, shape index: {}]   ;;  %s1116_s1 = inlined_call_operand.vmem [shape: bf16[3,144,128], index: 1, kind: input, shape index: {}]   ;;  %s1117_s2 = inlined_call_operand.vmem [shape: f32[1,128], index: 2, kind: input, shape index: {}]   ;;  %s1118_s3 = inlined_call_operand.vmem [shape: f32[2,16,128], index: 3, kind: output, shape index: {0}]   ;;  %s1119_s4 = inlined_call_operand.vmem [shape: f32[2,1,128], index: 4, kind: output, shape index: {1}]   ;;  %s1120_s5 = inlined_call_operand.vmem [shape: f32[2,1,128], index: 5, kind: output, shape index: {2}]  }
   0x1 LB: > { %s786_s19 = sadd.s32 4294967295, %s919_s18   ;;  %p790_p0 = scmp.ge.s32.totalorder %s919_s18, 1  ;;  %s919_s18 = sphi %s952_s18, %s16_s18  }
   0x2   : > { %p192_p1 = scmp.lt.s32.totalorder %s919_s18, 3 }
   0x4   : > { %p193_p2 = pnand %p790_p0, %p192_p1 }
   0x5   : > { %p226_p3 = scmp.lt.s32.totalorder (!%p193_p2), %s786_s19, 1 }
   0x6   : > { %196 = sbr.rel (%p193_p2) target bundleno = 302 (0x12e), region = 32 }
   0xb   : > { %v880_v0 = vld [vmem:[%s1116_s1 + $0x80] sm:$0xff]   ;;  %v921_v1 = vmov 0   ;;  %v881_v2 = vld [vmem:[%s1116_s1 + $0x38] sm:$0xff]   ;;  %v883_v4 = vld [vmem:[%s1116_s1 + $0x30] sm:$0xff]   ;;  %s1122_s19 = smov (!%p226_p3, %s786_s19), 1  ;;  %vm376_vm0 = vcmask 130048  }
   0xc   : > { %380 = vmatprep.subr.bf16.mxu0 %v921_v1  ;;  %478 = vmatprep.subr.bf16.mxu1 %v921_v1  ;;  %v882_v3 = vld [vmem:[%s1116_s1 + $0x78] sm:$0xff]   ;;  %v884_v5 = vld [vmem:[%s1116_s1 + $0x70] sm:$0xff]   ;;  %v885_v6 = vld [vmem:[%s1116_s1 + $0x28] sm:$0xff]   ;;  %s870_s11 = smul.u32 24, %s1122_s19  ;;  %vm296_vm1 = vsmask.f32 7424  ;;  %s238_s15 = scalar_lea.vmem %s1119_s4, %s1122_s19 }
   0xd   : > { %381 = vmatpush1.bf16.msra.mxu0 %v880_v0  ;;  %479 = vmatpush1.bf16.msra.mxu1 %v881_v2  ;;  %v886_v7 = vld [vmem:[%s1116_s1 + $0x68] sm:$0xff]   ;;  %v887_v8 = vld [vmem:[%s1116_s1 + $0x20] sm:$0xff]   ;;  %v889_v10 = vld [vmem:[%s1116_s1 + $0x18] sm:$0xff]   ;;  %vm544_vm2 = vcmask 1046528   ;;  %s869_s7 = sshll.u32 %s1122_s19, 4 }
   0xe   : > { %382 = vmatprep.subr.bf16.mxu0 %v921_v1  ;;  %480 = vmatprep.subr.bf16.mxu1 %v921_v1  ;;  %v888_v9 = vld [vmem:[%s1116_s1 + $0x60] sm:$0xff]   ;;  %s1005_s20 = scalar_lea.vmem %s1115_s0, %s870_s11  ;;  %v890_v11 = vld [vmem:[%s1116_s1 + $0x58] sm:$0xff]   ;;  %v891_v15 = vld [vmem:[%s1116_s1 + $0x10] sm:$0xff]   ;;  %s235_s12 = scalar_lea.vmem %s1118_s3, %s869_s7 }
   0xf   : > { %v243_v12 = vld [vmem:[%s1005_s20] sm:$0xff]  ;;  %v1013_v13 = vld [vmem:[%s1005_s20 + $0x8] sm:$0xff]  ;;  %v263_v14 = vld [vmem:[%s1005_s20 + $0x10] sm:$0x11] }
  0x10   : > { %v813_v16 = vcombine.high %v243_v12, %v1013_v13  ;;  %v815_v17 = vcombine.high %v263_v14, %v263_v14  ;;  %v812_v18 = vcombine.low %v243_v12, %v1013_v13  ;;  %v892_v22 = vld [vmem:[%s1116_s1 + $0x50] sm:$0xff]   ;;  %v893_v23 = vld [vmem:[%s1116_s1 + $0x8] sm:$0xff]   ;;  %v1030_v24 = vcombine.low %v263_v14, %v263_v14  ;;  %v895_v33 = vld [vmem:[%s1116_s1] sm:$0xff]  }
  0x11   : > { %383 = vmatpush1.bf16.msra.mxu0 %v882_v3  ;;  %481 = vmatpush1.bf16.msra.mxu1 %v883_v4  ;;  %v894_v28 = vld [vmem:[%s1116_s1 + $0x48] sm:$0xff]   ;;  %v519_v35 = vld [vmem:[%s1005_s20] sm:$0xee]  ;;  %v904_v47 = vld [vmem:[%s1116_s1 + $0xb8] sm:$0xff]   ;;  %s241_s20 = scalar_lea.vmem %s1120_s5, %s1122_s19 }
  0x12   : > { %384 = vmatprep.subr.bf16.mxu0 %v921_v1  ;;  %482 = vmatprep.subr.bf16.mxu1 %v921_v1  ;;  %v310_v19 = vshrl.u32 %v813_v16, 16  ;;  %v312_v20 = vshll.u32 %v813_v16, 16  ;;  %v317_v21 = vshll.u32 %v815_v17, 16  ;;  %v300_v25 = vshll.u32 %v812_v18, 16  ;;  %v896_v36 = vld [vmem:[%s1116_s1 + $0x88] sm:$0xff]   ;;  %v897_v40 = vld [vmem:[%s1116_s1 + $0x40] sm:$0xff]  }
  0x13   : > { %835 = vmatprep.mubr.msk.bf16.mxu1 %vm376_vm0, %v813_v16  ;;  %v298_v30 = vshrl.u32 %v812_v18, 16  ;;  %v305_v32 = vshll.u32 %v1030_v24, 16  ;;  %v855_v39 = vcombine.high %v519_v35, %v1013_v13  ;;  %v549_v42 = vrot.slane %v815_v17, 1  ;;  %v902_v44 = vld [vmem:[%s1116_s1 + $0xc8] sm:$0xff]   ;;  %v903_v46 = vld [vmem:[%s1116_s1 + $0xc0] sm:$0xff]   ;;  %v905_v48 = vld [vmem:[%s1116_s1 + $0xb0] sm:$0xff]  }
  0x14   : > { %v314_v26 = vrot.slane %v312_v20, 1  ;;  %v319_v27 = vrot.slane %v317_v21, 1  ;;  %v302_v31 = vrot.slane %v300_v25, 1  ;;  %v906_v49 = vld [vmem:[%s1116_s1 + $0xa8] sm:$0xff]   ;;  %v907_v50 = vld [vmem:[%s1116_s1 + $0xa0] sm:$0xff]   ;;  %v908_v51 = vld [vmem:[%s1116_s1 + $0x98] sm:$0xff]   ;;  %v854_v53 = vcombine.low %v519_v35, %v1013_v13 }
  0x15   : > { %385 = vmatpush1.bf16.msra.mxu0 %v884_v5  ;;  %483 = vmatpush1.bf16.msra.mxu1 %v885_v6  ;;  %v307_v38 = vrot.slane %v305_v32, 1  ;;  %v548_v41 = vrot.slane %v855_v39, 1  ;;  %v909_v52 = vld [vmem:[%s1116_s1 + $0x90] sm:$0xff]   ;;  %v546_v56 = vrot.slane %v1030_v24, 1  ;;  %v866_v5 = vld [vmem:[%s1117_s2] ss:$0 sm:$0xff] }
  0x16   : > { %386 = vmatprep.subr.bf16.mxu0 %v921_v1  ;;  %484 = vmatprep.subr.bf16.mxu1 %v921_v1  ;;  %v315_v29 = vor.u32 %v314_v26, %v310_v19  ;;  %v303_v37 = vor.u32 %v302_v31, %v298_v30  ;;  %v910_v54 = vld [vmem:[%s1116_s1 + $0xd0] sm:$0xff]   ;;  %v545_v55 = vrot.slane %v854_v53, 1 }
  0x17   : > { %v550_v45 = vsel %vm544_vm2, %v548_v41, %v549_v42 }
  0x18   : > { %v320_v34 = vsel %vm296_vm1, %v315_v29, %v319_v27  ;;  %v308_v43 = vsel %vm296_vm1, %v303_v37, %v307_v38  ;;  %v547_v57 = vsel %vm544_vm2, %v545_v55, %v546_v56 }
  0x19   : > { %387 = vmatpush1.bf16.msra.mxu0 %v886_v7  ;;  %485 = vmatpush1.bf16.msra.mxu1 %v887_v8 }
  0x1a   : > { %388 = vmatprep.subr.bf16.mxu0 %v921_v1  ;;  %486 = vmatprep.subr.bf16.mxu1 %v921_v1 }
  0x1b   : > { %825 = vmatprep.mubr.msk.bf16.mxu0 %vm376_vm0, %v320_v34 }
  0x1d   : > { %389 = vmatpush1.bf16.msra.mxu0 %v888_v9  ;;  %487 = vmatpush1.bf16.msra.mxu1 %v889_v10 }
  0x1e   : > { %390 = vmatprep.subr.bf16.mxu0 %v921_v1  ;;  %488 = vmatprep.subr.bf16.mxu1 %v921_v1 }
  0x21   : > { %391 = vmatpush1.bf16.msra.mxu0 %v890_v11  ;;  %489 = vmatpush1.bf16.msra.mxu1 %v891_v15 }
  0x22   : > { %392 = vmatprep.subr.bf16.mxu0 %v921_v1  ;;  %490 = vmatprep.subr.bf16.mxu1 %v921_v1 }
  0x25   : > { %393 = vmatpush1.bf16.msra.mxu0 %v892_v22  ;;  %491 = vmatpush1.bf16.msra.mxu1 %v893_v23 }
  0x26   : > { %394 = vmatprep.subr.bf16.mxu0 %v921_v1  ;;  %492 = vmatprep.subr.bf16.mxu1 %v921_v1 }
  0x29   : > { %395 = vmatpush1.bf16.msra.mxu0 %v894_v28  ;;  %493 = vmatpush1.bf16.msra.mxu1 %v895_v33 }
  0x2a   : > { %410 = vmatprep.subr.bf16.mxu0 %v921_v1  ;;  %508 = vmatprep.subr.bf16.mxu1 %v921_v1 }
  0x2d   : > { %411 = vmatpush2.bf16.msra.mxu0 %v896_v36  ;;  %509 = vmatpush2.bf16.msra.mxu1 %v897_v40 }
  0x2e   : > { %609 = vmatprep.subr.bf16.mxu0 %v921_v1 }
  0x30   : > { %413 = vmatmul.mubr.bf16.vlgmr.msra.gmra.mxu0 %v308_v43  ;;  %511 = vmatmul.mubr.bf16.vlgmr.msra.gmra.mxu1 %v812_v18 }
  0x31   : > { %610 = vmatpush1.bf16.msra.mxu0 %v902_v44  ;;  %865 = vmatprep.mubr.msk.bf16.mxu0 %vm376_vm0, %v550_v45 }
  0x32   : > { %611 = vmatprep.subr.bf16.mxu0 %v921_v1 }
  0x35   : > { %612 = vmatpush1.bf16.msra.mxu0 %v903_v46 }
  0x36   : > { %613 = vmatprep.subr.bf16.mxu0 %v921_v1 }
  0x39   : > { %614 = vmatpush1.bf16.msra.mxu0 %v904_v47 }
  0x3a   : > { %615 = vmatprep.subr.bf16.mxu0 %v921_v1 }
  0x3d   : > { %616 = vmatpush1.bf16.msra.mxu0 %v905_v48 }
  0x3e   : > { %617 = vmatprep.subr.bf16.mxu0 %v921_v1 }
  0x41   : > { %618 = vmatpush1.bf16.msra.mxu0 %v906_v49 }
  0x42   : > { %619 = vmatprep.subr.bf16.mxu0 %v921_v1 }
  0x45   : > { %620 = vmatpush1.bf16.msra.mxu0 %v907_v50 }
  0x46   : > { %621 = vmatprep.subr.bf16.mxu0 %v921_v1 }
  0x49   : > { %622 = vmatpush1.bf16.msra.mxu0 %v908_v51 }
  0x4a   : > { %623 = vmatprep.subr.bf16.mxu0 %v921_v1 }
  0x4d   : > { %624 = vmatpush1.bf16.msra.mxu0 %v909_v52 }
  0x4e   : > { %639 = vmatprep.subr.bf16.mxu0 %v921_v1 }
  0x51   : > { %640 = vmatpush2.bf16.msra.mxu0 %v910_v54 }
  0x54   : > { %642 = vmatmul.mubr.bf16.vlgmr.msra.gmra.mxu0 %v547_v57 }
  0xf0   : > { %v414_v58 = vpop.f32.mrf.mxu0  ;;  %v512_v59 = vpop.f32.mrf.mxu1 }
  0xf1   : > { %v513_v3 = vadd.f32 %v512_v59, %v414_v58 }
  0xf2   : > { %v416_v60 = vpop.f32.mrf.mxu0  ;;  %v514_v61 = vpop.f32.mrf.mxu1 }
  0xf4   : > { %v417_v62 = vpop.f32.mrf.mxu0  ;;  %v515_v63 = vpop.f32.mrf.mxu1 }
  0xf5   : > { %v516_v7 = vadd.f32 %v515_v63, %v417_v62 }
  0xf6   : > { %v419_v0 = vpop.f32.mrf.mxu0  ;;  %v517_v2 = vpop.f32.mrf.mxu1 }
 0x114   : > { %v643_v4 = vpop.f32.mrf.mxu0 }
 0x115   : > { %v650_v1 = vadd.f32 %v643_v4, %v513_v3 }
 0x116   : > { %v645_v6 = vpop.f32.mrf.mxu0 }
 0x117   : > { %v659_v8 = vadd.f32 %v866_v5, %v650_v1 }
 0x118   : > { %v646_v9 = vpop.f32.mrf.mxu0 }
 0x119   : > { %661 = vst [vmem:[%s235_s12] sm:$0xff] %v659_v8  ;;  %v651_v10 = vadd.f32 %v646_v9, %v516_v7  ;;  %v671_v13 = vmul.f32 %v659_v8, %v659_v8 }
 0x11a   : > { %v648_v11 = vpop.f32.mrf.mxu0 }
 0x11b   : > { %v660_v12 = vadd.f32 %v866_v5, %v651_v10 }
 0x11d   : > { %662 = vst [vmem:[%s235_s12 + $0x8] sm:$0xff] %v660_v12  ;;  %v663_v14 = vadd.f32 %v660_v12, %v659_v8  ;;  %v672_v15 = vmul.f32 %v660_v12, %v660_v12 }
 0x11f   : > { %v664_v16 = vrot.slane %v663_v14, 4  ;;  %v673_v17 = vadd.f32 %v672_v15, %v671_v13 }
 0x121   : > { %v665_v18 = vadd.f32 %v664_v16, %v663_v14  ;;  %v674_v19 = vrot.slane %v673_v17, 4 }
 0x123   : > { %v666_v20 = vrot.slane %v665_v18, 2  ;;  %v675_v21 = vadd.f32 %v674_v19, %v673_v17 }
 0x125   : > { %v667_v22 = vadd.f32 %v666_v20, %v665_v18  ;;  %v676_v23 = vrot.slane %v675_v21, 2 }
 0x127   : > { %v668_v24 = vrot.slane %v667_v22, 1  ;;  %v677_v25 = vadd.f32 %v676_v23, %v675_v21 }
 0x129   : > { %v669_v26 = vadd.f32 %v668_v24, %v667_v22  ;;  %v678_v27 = vrot.slane %v677_v25, 1 }
 0x12b   : > { %670 = vst [vmem:[%s238_s15] sm:$0x1] %v669_v26  ;;  %v679_v28 = vadd.f32 %v678_v27, %v677_v25 }
 0x12d   : > { %680 = vst [vmem:[%s241_s20] sm:$0x1] %v679_v28 }
 0x12e PF: > { %s16_s18 = sadd.s32 1, %s919_s18  }
 0x12f   : > { %p13_p4 = scmp.ge.s32.totalorder %s16_s18, 4  }
 0x131   :  { %15 = sbr.rel (!%p13_p4) target bundleno = 1 (0x1), region = 88 }

// kernel: conv_block_forward.7
= control target key start
LH: loop header
LB: loop body
LE: loop exit
PB: predicated region body
PF: predicated region fallthrough
CT: control target
= control target key end

     0   :  { %s104_s0 = inlined_call_operand.vmem [shape: f32[32,128], index: 0, kind: input, shape index: {}]   ;;  %s105_s1 = inlined_call_operand.vmem [shape: f32[1,128], index: 1, kind: input, shape index: {}]   ;;  %s106_s2 = inlined_call_operand.vmem [shape: f32[1,128], index: 2, kind: input, shape index: {}]   ;;  %s107_s3 = inlined_call_operand.vmem [shape: f32[32,128], index: 3, kind: output, shape index: {}]  }
   0x1   :  { %v14_v0 = vld [vmem:[%s104_s0] sm:$0xff]  ;;  %v15_v4 = vld [vmem:[%s104_s0 + $0x8] sm:$0xff]  ;;  %v16_v5 = vld [vmem:[%s104_s0 + $0x10] sm:$0xff] }
   0x2   :  { %v52_v1 = vld [vmem:[%s105_s1] ss:$0 sm:$0xff]  ;;  %v17_v6 = vld [vmem:[%s104_s0 + $0x18] sm:$0xff] }
   0x3   :  { %v53_v2 = vld [vmem:[%s106_s2] ss:$0 sm:$0xff]  ;;  %v25_v3 = vmul.f32 %v52_v1, %v14_v0  ;;  %v26_v7 = vmul.f32 %v52_v1, %v15_v4  ;;  %v27_v8 = vmul.f32 %v52_v1, %v16_v5  ;;  %v28_v9 = vmul.f32 %v52_v1, %v17_v6 }
   0x5   :  { %v36_v10 = vadd.f32 %v53_v2, %v25_v3  ;;  %v37_v11 = vadd.f32 %v53_v2, %v26_v7  ;;  %v38_v12 = vadd.f32 %v53_v2, %v27_v8  ;;  %v39_v13 = vadd.f32 %v53_v2, %v28_v9 }
   0x7   :  { %v40_v14 = vmax.f32 %v36_v10, 0.0  ;;  %v41_v15 = vmax.f32 %v37_v11, 0.0  ;;  %v42_v16 = vmax.f32 %v38_v12, 0.0  ;;  %v43_v17 = vmax.f32 %v39_v13, 0.0 }
   0x9   :  { %44 = vst [vmem:[%s107_s3] sm:$0xff] %v40_v14  ;;  %45 = vst [vmem:[%s107_s3 + $0x8] sm:$0xff] %v41_v15 }
   0xa   :  { %46 = vst [vmem:[%s107_s3 + $0x10] sm:$0xff] %v42_v16  ;;  %47 = vst [vmem:[%s107_s3 + $0x18] sm:$0xff] %v43_v17 }

</bundles_post_ra>
